<compile_context>
chip_gen: v7x
topology: tpu7x:2x2x1
jax: 0.10.0
libtpu: 0.0.40
codegen_flags: <defaults>
</compile_context>

<pallas_src>
import jax
import jax.numpy as jnp
from jax.experimental import pallas as pl
from jax.experimental.pallas import tpu as pltpu

USE_LN = True      # GNN(..., useln=True)
USE_RES = True     # GNN(..., res=True)
NEG_SLOPE = 0.01   # nn.LeakyReLU default
LN_EPS = 1e-5
BN_EPS = 1e-5


# ------------------------- fused multi-layer Pallas kernel -------------------------

def _gnn_stack_kernel(x_ref, a_ref, w_ref, wr_ref, vec_ref, out_ref, h_ref):
    """One grid step per GNN layer; activation (N,F) stays resident in VMEM.

    Per layer: h -> LayerNorm -> (h@W, A_hat@(.)) [+ h@Wr residual]
               -> folded eval-BatchNorm affine -> LeakyReLU.
    """
    layer = pl.program_id(0)

    @pl.when(layer == 0)
    def _():
        h_ref[...] = x_ref[...]          # seed the carry with the graph features

    h = h_ref[...]
    v = vec_ref[0]                       # (4, F): [ln_gamma; ln_beta; bn_scale; shift]

    if USE_LN:
        mu = jnp.mean(h, axis=-1, keepdims=True)
        var = jnp.mean((h - mu) ** 2, axis=-1, keepdims=True)
        h = (h - mu) * jax.lax.rsqrt(var + LN_EPS) * v[0:1, :] + v[1:2, :]

    # Two separate MXU passes (no concat, no lane-offset slicing).
    hw = jnp.dot(h, w_ref[0], preferred_element_type=jnp.float32)       # GCN linear
    out = jnp.dot(a_ref[...], hw, preferred_element_type=jnp.float32)   # aggregation
    if USE_RES:
        out = out + jnp.dot(h, wr_ref[0], preferred_element_type=jnp.float32)

    # Eval-mode BatchNorm1d folded (with gcn bias + residual bias) into one affine.
    out = out * v[2:3, :] + v[3:4, :]
    out = jnp.where(out > 0, out, NEG_SLOPE * out)   # LeakyReLU
    # TODO(synk): F.dropout with training=True (stochastic) not implemented; eval => identity.

    h_ref[...] = out                     # carry to next layer (VMEM only)

    @pl.when(layer == pl.num_programs(0) - 1)
    def _():
        out_ref[...] = out               # only the last layer writes back to HBM


# ------------------------- wrapper -------------------------

def gnn_stack_forward(x, a_hat, stacked):
    """Runs L fused GNN layers in a single pallas_call."""
    N, f_in = x.shape
    L, _, f_out = stacked["w"].shape
    assert f_in == f_out, "layer stack requires hide -> hide layers"

    full2 = lambda shape: pl.BlockSpec(shape, lambda l: (0, 0))
    per_layer = lambda shape: pl.BlockSpec(shape, lambda l: (l, 0, 0))

    return pl.pallas_call(
        _gnn_stack_kernel,
        out_shape=jax.ShapeDtypeStruct((N, f_out), jnp.float32),
        grid_spec=pltpu.PrefetchScalarGridSpec(
            num_scalar_prefetch=0,
            grid=(L,),
            in_specs=[full2((N, f_in)),                # x (read only at layer 0)
                      full2((N, N)),                   # A_hat (dense GCN-normalized)
                      per_layer((1, f_in, f_out)),     # W[l]
                      per_layer((1, f_in, f_out)),     # Wr[l]
                      per_layer((1, 4, f_in))],        # [ln_g; ln_b; bn_scale; shift][l]
            out_specs=full2((N, f_out)),
            scratch_shapes=[pltpu.VMEM((N, f_out), jnp.float32)]),  # activation carry
        compiler_params=pltpu.CompilerParams(
            dimension_semantics=("arbitrary",),        # layers are a sequential carry
            vmem_limit_bytes=32 * 1024 * 1024),
    )(x, a_hat, stacked["w"], stacked["wr"], stacked["vec"])


def prepare_stacked_params(layer_params):
    """One-time trace-time constant folding (hoisted out of the per-call path)."""
    ws, wrs, vecs = [], [], []
    for p in layer_params:
        bn_scale = p["bn_gamma"] / jnp.sqrt(p["bn_var"] + BN_EPS)
        bn_shift = p["bn_beta"] - p["bn_mean"] * bn_scale
        bias = p["bias"] + (p["br"] if USE_RES else 0.0)
        shift = bias * bn_scale + bn_shift
        ws.append(p["w"])
        wrs.append(p["wr"] if USE_RES else jnp.zeros_like(p["w"]))
        vecs.append(jnp.stack([p["ln_g"], p["ln_b"], bn_scale, shift], axis=0))
    return {"w": jnp.stack(ws), "wr": jnp.stack(wrs), "vec": jnp.stack(vecs)}


# ------------------------- pure-JAX reference -------------------------

def gnn_stack_reference(x, a_hat, layer_params):
    h = x
    for p in layer_params:
        hin = h
        if USE_LN:
            mu = jnp.mean(hin, -1, keepdims=True)
            var = jnp.mean((hin - mu) ** 2, -1, keepdims=True)
            hin = (hin - mu) / jnp.sqrt(var + LN_EPS) * p["ln_g"] + p["ln_b"]
        out = a_hat @ (hin @ p["w"]) + p["bias"]
        if USE_RES:
            out = out + hin @ p["wr"] + p["br"]
        bn_scale = p["bn_gamma"] / jnp.sqrt(p["bn_var"] + BN_EPS)
        bn_shift = p["bn_beta"] - p["bn_mean"] * bn_scale
        out = out * bn_scale + bn_shift
        h = jnp.where(out > 0, out, NEG_SLOPE * out)
    return h


# ------------------------- main -------------------------

if __name__ == "__main__":
    height, width, hide, n_layers = 8, 8, 32, 2       # MPNN: layers_count = 2
    N = height * width

    key = jax.random.PRNGKey(0)
    k_x, k_adj, k_params = jax.random.split(key, 3)

    x = jax.random.normal(k_x, (N, hide), jnp.float32)

    # Synthetic symmetric graph -> dense GCN-normalized adjacency A_hat.
    raw = jax.random.uniform(k_adj, (N, N)) < 0.1
    adj = jnp.maximum(raw, raw.T).astype(jnp.float32)
    adj = adj + jnp.eye(N, dtype=jnp.float32)          # add self loops
    deg = jnp.sum(adj, axis=1)
    dinv = 1.0 / jnp.sqrt(deg)
    a_hat = adj * dinv[:, None] * dinv[None, :]

    # Deterministic per-layer parameters (GCNConv, rslin, LayerNorm, BatchNorm1d).
    layer_params = []
    for li, lkey in enumerate(jax.random.split(k_params, n_layers)):
        ks = jax.random.split(lkey, 10)
        layer_params.append({
            "w":        0.1 * jax.random.normal(ks[0], (hide, hide), jnp.float32),
            "bias":     0.1 * jax.random.normal(ks[1], (hide,), jnp.float32),
            "wr":       0.1 * jax.random.normal(ks[2], (hide, hide), jnp.float32),
            "br":       0.1 * jax.random.normal(ks[3], (hide,), jnp.float32),
            "ln_g":     1.0 + 0.05 * jax.random.normal(ks[4], (hide,), jnp.float32),
            "ln_b":     0.05 * jax.random.normal(ks[5], (hide,), jnp.float32),
            "bn_gamma": 1.0 + 0.05 * jax.random.normal(ks[6], (hide,), jnp.float32),
            "bn_beta":  0.05 * jax.random.normal(ks[7], (hide,), jnp.float32),
            "bn_mean":  0.05 * jax.random.normal(ks[8], (hide,), jnp.float32),
            "bn_var":   1.0 + 0.1 * jax.random.uniform(ks[9], (hide,), jnp.float32),
        })

    stacked = prepare_stacked_params(layer_params)     # done once, not per call

    out = jax.block_until_ready(gnn_stack_forward(x, a_hat, stacked))
    ref = gnn_stack_reference(x, a_hat, layer_params)
    assert out.shape == (N, hide)
    assert jnp.allclose(out, ref, atol=1e-4, rtol=1e-4), "mismatch vs reference"
    print("KERNEL_OK")
</pallas_src>

<mosaic_0001>
module attributes {stable_mosaic.version = 11 : i64} {
  func.func @_gnn_stack_kernel(%arg0: i32, %arg1: memref<64x32xf32, #tpu.memory_space<vmem>>, %arg2: memref<64x64xf32, #tpu.memory_space<vmem>>, %arg3: memref<1x32x32xf32, #tpu.memory_space<vmem>>, %arg4: memref<1x32x32xf32, #tpu.memory_space<vmem>>, %arg5: memref<1x4x32xf32, #tpu.memory_space<vmem>>, %arg6: memref<64x32xf32, #tpu.memory_space<vmem>>, %arg7: memref<64x32xf32, #tpu.memory_space<vmem>>) attributes {dimension_semantics = [#tpu.dimension_semantics<arbitrary>], iteration_bounds = array<i64: 2>, scalar_prefetch = 0 : i64, scratch_operands = 1 : i64, tpu.core_type = #tpu.core_type<tc>, window_params = [{pipeline_mode = #tpu.pipeline_mode<synchronous>, transform_indices = @transform_0, window_bounds = array<i64: 64, 32>}, {pipeline_mode = #tpu.pipeline_mode<synchronous>, transform_indices = @transform_1, window_bounds = array<i64: 64, 64>}, {transform_indices = @transform_2, window_bounds = array<i64: 1, 32, 32>}, {transform_indices = @transform_3, window_bounds = array<i64: 1, 32, 32>}, {transform_indices = @transform_4, window_bounds = array<i64: 1, 4, 32>}, {pipeline_mode = #tpu.pipeline_mode<synchronous>, transform_indices = @transform_5, window_bounds = array<i64: 64, 32>}]} {
    %c0_i32 = arith.constant 0 : i32
    %0 = arith.cmpi eq, %arg0, %c0_i32 : i32
    %1 = arith.extui %0 : i1 to i32
    %c0_i32_0 = arith.constant 0 : i32
    %2 = arith.cmpi ne, %1, %c0_i32_0 : i32
    scf.if %2 {
      %c0_25 = arith.constant 0 : index
      %c0_26 = arith.constant 0 : index
      %54 = vector.load %arg1[%c0_25, %c0_26] : memref<64x32xf32, #tpu.memory_space<vmem>>, vector<64x32xf32>
      %c0_27 = arith.constant 0 : index
      %c0_28 = arith.constant 0 : index
      %55 = vector.load %arg7[%c0_27, %c0_28] : memref<64x32xf32, #tpu.memory_space<vmem>>, vector<64x32xf32>
      tpu.vector_store %arg7[%c0_27, %c0_28], %54 {strides = array<i32>} : memref<64x32xf32, #tpu.memory_space<vmem>>, vector<64x32xf32>,
    } else {
    }
    %c0 = arith.constant 0 : index
    %c0_1 = arith.constant 0 : index
    %3 = vector.load %arg7[%c0, %c0_1] : memref<64x32xf32, #tpu.memory_space<vmem>>, vector<64x32xf32>
    %c0_2 = arith.constant 0 : index
    %c0_3 = arith.constant 0 : index
    %c0_4 = arith.constant 0 : index
    %4 = vector.load %arg5[%c0_2, %c0_3, %c0_4] : memref<1x4x32xf32, #tpu.memory_space<vmem>>, vector<1x4x32xf32>
    %5 = vector.shape_cast %4 : vector<1x4x32xf32> to vector<4x32xf32>
    %cst = arith.constant dense<0.000000e+00> : vector<64xf32>
    %6 = vector.multi_reduction <add>, %3, %cst [1] : vector<64x32xf32> to vector<64xf32>
    %7 = vector.shape_cast %6 : vector<64xf32> to vector<64x1xf32>
    %cst_5 = arith.constant 3.200000e+01 : f32
    %8 = vector.broadcast %cst_5 : f32 to vector<64x1xf32>
    %9 = arith.divf %7, %8 : vector<64x1xf32>
    %10 = vector.broadcast %9 : vector<64x1xf32> to vector<64x32xf32>
    %11 = arith.subf %3, %10 : vector<64x32xf32>
    %12 = arith.mulf %11, %11 : vector<64x32xf32>
    %cst_6 = arith.constant dense<0.000000e+00> : vector<64xf32>
    %13 = vector.multi_reduction <add>, %12, %cst_6 [1] : vector<64x32xf32> to vector<64xf32>
    %14 = vector.shape_cast %13 : vector<64xf32> to vector<64x1xf32>
    %cst_7 = arith.constant 3.200000e+01 : f32
    %15 = vector.broadcast %cst_7 : f32 to vector<64x1xf32>
    %16 = arith.divf %14, %15 : vector<64x1xf32>
    %17 = vector.broadcast %9 : vector<64x1xf32> to vector<64x32xf32>
    %18 = arith.subf %3, %17 : vector<64x32xf32>
    %cst_8 = arith.constant 9.99999974E-6 : f32
    %19 = vector.broadcast %cst_8 : f32 to vector<64x1xf32>
    %20 = arith.addf %16, %19 : vector<64x1xf32>
    %21 = math.rsqrt %20 : vector<64x1xf32>
    %22 = vector.broadcast %21 : vector<64x1xf32> to vector<64x32xf32>
    %23 = arith.mulf %18, %22 : vector<64x32xf32>
    %24 = vector.extract_strided_slice %5 {offsets = [0, 0], sizes = [1, 32], strides = [1, 1]} : vector<4x32xf32> to vector<1x32xf32>
    %25 = vector.broadcast %24 : vector<1x32xf32> to vector<64x32xf32>
    %26 = arith.mulf %23, %25 : vector<64x32xf32>
    %27 = vector.extract_strided_slice %5 {offsets = [1, 0], sizes = [1, 32], strides = [1, 1]} : vector<4x32xf32> to vector<1x32xf32>
    %28 = vector.broadcast %27 : vector<1x32xf32> to vector<64x32xf32>
    %29 = arith.addf %26, %28 : vector<64x32xf32>
    %c0_9 = arith.constant 0 : index
    %c0_10 = arith.constant 0 : index
    %c0_11 = arith.constant 0 : index
    %30 = vector.load %arg3[%c0_9, %c0_10, %c0_11] : memref<1x32x32xf32, #tpu.memory_space<vmem>>, vector<1x32x32xf32>
    %31 = vector.shape_cast %30 : vector<1x32x32xf32> to vector<32x32xf32>
    %cst_12 = arith.constant dense<0.000000e+00> : vector<64x32xf32>
    %32 = tpu.matmul %29, %31, %cst_12 {dimension_numbers = #tpu.dot_dimension_numbers<[1], [0], [0], [1], [0, 0, 1, 1], [], []>} : vector<64x32xf32>, vector<32x32xf32>, vector<64x32xf32> -> vector<64x32xf32>
    %c0_13 = arith.constant 0 : index
    %c0_14 = arith.constant 0 : index
    %33 = vector.load %arg2[%c0_13, %c0_14] : memref<64x64xf32, #tpu.memory_space<vmem>>, vector<64x64xf32>
    %cst_15 = arith.constant dense<0.000000e+00> : vector<64x32xf32>
    %34 = tpu.matmul %33, %32, %cst_15 {dimension_numbers = #tpu.dot_dimension_numbers<[1], [0], [0], [1], [0, 0, 1, 1], [], []>} : vector<64x64xf32>, vector<64x32xf32>, vector<64x32xf32> -> vector<64x32xf32>
    %c0_16 = arith.constant 0 : index
    %c0_17 = arith.constant 0 : index
    %c0_18 = arith.constant 0 : index
    %35 = vector.load %arg4[%c0_16, %c0_17, %c0_18] : memref<1x32x32xf32, #tpu.memory_space<vmem>>, vector<1x32x32xf32>
    %36 = vector.shape_cast %35 : vector<1x32x32xf32> to vector<32x32xf32>
    %cst_19 = arith.constant dense<0.000000e+00> : vector<64x32xf32>
    %37 = tpu.matmul %29, %36, %cst_19 {dimension_numbers = #tpu.dot_dimension_numbers<[1], [0], [0], [1], [0, 0, 1, 1], [], []>} : vector<64x32xf32>, vector<32x32xf32>, vector<64x32xf32> -> vector<64x32xf32>
    %38 = arith.addf %34, %37 : vector<64x32xf32>
    %39 = vector.extract_strided_slice %5 {offsets = [2, 0], sizes = [1, 32], strides = [1, 1]} : vector<4x32xf32> to vector<1x32xf32>
    %40 = vector.broadcast %39 : vector<1x32xf32> to vector<64x32xf32>
    %41 = arith.mulf %38, %40 : vector<64x32xf32>
    %42 = vector.extract_strided_slice %5 {offsets = [3, 0], sizes = [1, 32], strides = [1, 1]} : vector<4x32xf32> to vector<1x32xf32>
    %43 = vector.broadcast %42 : vector<1x32xf32> to vector<64x32xf32>
    %44 = arith.addf %41, %43 : vector<64x32xf32>
    %cst_20 = arith.constant 0.000000e+00 : f32
    %45 = vector.broadcast %cst_20 : f32 to vector<64x32xf32>
    %46 = arith.cmpf ogt, %44, %45 : vector<64x32xf32>
    %cst_21 = arith.constant 0.00999999977 : f32
    %47 = vector.broadcast %cst_21 : f32 to vector<64x32xf32>
    %48 = arith.mulf %47, %44 : vector<64x32xf32>
    %49 = arith.select %46, %44, %48 : vector<64x32xi1>, vector<64x32xf32>
    %c0_22 = arith.constant 0 : index
    %c0_23 = arith.constant 0 : index
    %50 = vector.load %arg7[%c0_22, %c0_23] : memref<64x32xf32, #tpu.memory_space<vmem>>, vector<64x32xf32>
    tpu.vector_store %arg7[%c0_22, %c0_23], %49 {strides = array<i32>} : memref<64x32xf32, #tpu.memory_space<vmem>>, vector<64x32xf32>,
    %c1_i32 = arith.constant 1 : i32
    %51 = arith.cmpi eq, %arg0, %c1_i32 : i32
    %52 = arith.extui %51 : i1 to i32
    %c0_i32_24 = arith.constant 0 : i32
    %53 = arith.cmpi ne, %52, %c0_i32_24 : i32
    scf.if %53 {
      %c0_25 = arith.constant 0 : index
      %c0_26 = arith.constant 0 : index
      %54 = vector.load %arg6[%c0_25, %c0_26] : memref<64x32xf32, #tpu.memory_space<vmem>>, vector<64x32xf32>
      tpu.vector_store %arg6[%c0_25, %c0_26], %49 {strides = array<i32>} : memref<64x32xf32, #tpu.memory_space<vmem>>, vector<64x32xf32>,
    } else {
    }
    return
  }
  func.func @transform_0(%arg0: i32) -> (i32, i32) {
    %c0_i32 = arith.constant 0 : i32
    %c0_i32_0 = arith.constant 0 : i32
    %c0_i32_1 = arith.constant 0 : i32
    return %c0_i32, %c0_i32_0 : i32, i32
  }
  func.func @transform_1(%arg0: i32) -> (i32, i32) {
    %c0_i32 = arith.constant 0 : i32
    %c0_i32_0 = arith.constant 0 : i32
    %c0_i32_1 = arith.constant 0 : i32
    return %c0_i32, %c0_i32_0 : i32, i32
  }
  func.func @transform_2(%arg0: i32) -> (i32, i32, i32) {
    %c0_i32 = arith.constant 0 : i32
    %c0_i32_0 = arith.constant 0 : i32
    %c0_i32_1 = arith.constant 0 : i32
    return %arg0, %c0_i32, %c0_i32_0 : i32, i32, i32
  }
  func.func @transform_3(%arg0: i32) -> (i32, i32, i32) {
    %c0_i32 = arith.constant 0 : i32
    %c0_i32_0 = arith.constant 0 : i32
    %c0_i32_1 = arith.constant 0 : i32
    return %arg0, %c0_i32, %c0_i32_0 : i32, i32, i32
  }
  func.func @transform_4(%arg0: i32) -> (i32, i32, i32) {
    %c0_i32 = arith.constant 0 : i32
    %c0_i32_0 = arith.constant 0 : i32
    %c0_i32_1 = arith.constant 0 : i32
    return %arg0, %c0_i32, %c0_i32_0 : i32, i32, i32
  }
  func.func @transform_5(%arg0: i32) -> (i32, i32) {
    %c0_i32 = arith.constant 0 : i32
    %c0_i32_0 = arith.constant 0 : i32
    %c0_i32_1 = arith.constant 0 : i32
    return %c0_i32, %c0_i32_0 : i32, i32
  }
}

</mosaic_0001>

<bundles_post_ra>
// kernel: tpu_custom_call.1
= control target key start
LH: loop header
LB: loop body
LE: loop exit
PB: predicated region body
PF: predicated region fallthrough
CT: control target
= control target key end

     0   :  { %10 = vsyncpa [#allocation4], 0  ;;  %s1732_s0 = inlined_call_operand.vmem [shape: f32[64,32], index: 0, kind: input, shape index: {}]   ;;  %s1733_s1 = inlined_call_operand.vmem [shape: f32[64,64], index: 1, kind: input, shape index: {}]   ;;  %s1734_s2 = inlined_call_operand.hbm [shape: f32[2,32,32], index: 2, kind: input, shape index: {}]   ;;  %s1735_s3 = inlined_call_operand.hbm [shape: f32[2,32,32], index: 3, kind: input, shape index: {}]   ;;  %s1736_s4 = inlined_call_operand.vmem [shape: f32[2,4,32], index: 4, kind: input, shape index: {}]   ;;  %s1737_s5 = inlined_call_operand.vmem [shape: f32[64,32], index: 5, kind: output, shape index: {}]  }
   0x1   :  { %12 = vsyncpa [#allocation4 + $0x1], 0 }
   0x2   :  { %13 = vsyncpa [#allocation6], 0 }
   0x3   :  { %15 = vsyncpa [#allocation6 + $0x1], 0  ;;  %s1364_s18 = smov 0   ;;  %s1366_s19 = smov 0  }
   0x4   :  { %s1368_s20 = smov 0   ;;  %s1370_s21 = smov 0  }
   0x5 LB: > { %s1383_s22 = sadd.s32 4294967295, %s1328_s21   ;;  %s1386_s23 = sadd.s32 1, %s1328_s21   ;;  %s1328_s21 = sphi %s1370_s21, %s1747_s21   ;;  %s1324_s20 = sphi %s1368_s20, %s1746_s20   ;;  %s1320_s19 = sphi %s1366_s19, %s1745_s19   ;;  %s1316_s18 = sphi %s1364_s18, %s1744_s18  }
   0x6   : > { %s67_s24 = ssub.s32 %s1328_s21, %s1386_s23  ;;  %s70_s25 = sadd.s32 1, %s1324_s20 }
   0x7   : > { %p68_p0 = scmp.eq.s32.totalorder %s67_s24, 0  ;;  %p77_p1 = scmp.ne.s32.totalorder %s1324_s20, %s1320_s19 }
   0x8   : > { %p78_p2 = scmp.eq.s32.totalorder %s1328_s21, 0  ;;  %p83_p3 = scmp.ne.s32.totalorder %s1320_s19, %s1316_s18 }
   0x9   : > { %s1396_s26 = scalar_select %p68_p0, %s1324_s20, %s70_s25  }
   0xa   : > { %p79_p4 = por %p78_p2, %p77_p1  ;;  %p84_p5 = scmp.eq.s32.totalorder %s1383_s22, 0 }
   0xb   : > { %p1179_p6 = scmp.lt.s32.totalorder %s1328_s21, 2  ;;  %s1405_s28 = sand.u32 1, %s1324_s20  }
   0xc   : > { %p1400_p7 = por %p84_p5, %p83_p3  ;;  %s972_s29 = sshll.u32 %s1405_s28, 5 }
   0xd   : > { %s1010_s30 = sshll.u32 %s1328_s21, 9  ;;  %s190_s9 = scalar_lea.vmem [#allocation3], %s972_s29 }
   0xe   : > { %s1739_s27 = scalar_select %p1400_p7, 1, 0 }
   0xf   : > { %s1414_s8 = scalar_lea.hbm %s1734_s2, %s1010_s30  ;;  %s197_s10 = sshll.u32 %s190_s9, 4  ;;  %s1418_s10 = int_to_ptr.vmem [resolvable:$true] %s197_s10 }
  0x10   : > { %p1420_p8 = pnand %p1179_p6, %p79_p4  ;;  %s187_s12 = scalar_lea.sflag [#allocation4], %s1405_s28 }
  0x11   : > { %s1230_s13 = scalar_lea.hbm %s1414_s8, 512  ;;  %s1235_s16 = scalar_lea.hbm %s1734_s2, 1024 }
  0x12   : > { %p1231_p10 = scmp.ne.s32.totalorder %s1414_s8, %s1230_s13  ;;  %p1232_p11 = pneg %p1420_p8 }
  0x13   : > { %p1236_p0 = scmp.lt.u32.totalorder %s1414_s8, %s1734_s2  ;;  %p1237_p1 = scmp.lt.u32.totalorder %s1235_s16, %s1230_s13 }
  0x14   : > { %p1233_p12 = pnand %p1232_p11, %p1231_p10  ;;  %p1239_p3 = scmp.lt.u32.totalorder %s1230_s13, %s1414_s8 }
  0x15   : > { %p1238_p2 = por %p1237_p1, %p1236_p0 }
  0x16   : > { %p1234_p13 = pneg %p1233_p12 }
  0x17   : > { %p1240_p4 = por %p1239_p3, %p1238_p2 }
  0x19   : > { %p1241_p5 = pnand %p1240_p4, %p1234_p13 }
  0x1b   : > { %1244 = shalt.err (!%p1241_p5)
}
  0x1c   : > { %s1245_s24 = scalar_lea.vmem %s1418_s10, 512  ;;  %s1330_s25 = smov [#allocation3]  }
  0x1d   : > { %p1246_p6 = scmp.ne.s32.totalorder %s1418_s10, %s1245_s24  ;;  %s1250_s6 = sshll.u32 %s1330_s25, 4  ;;  %s1251_s6 = int_to_ptr.vmem [resolvable:$false] %s1250_s6 }
  0x1e   : > { %s1252_s7 = scalar_lea.vmem %s1251_s6, 1024  ;;  %p1253_p9 = scmp.lt.s32.totalorder %s1418_s10, %s1251_s6 }
  0x1f   : > { %p1248_p10 = pnand %p1246_p6, %p1232_p11  ;;  %p1254_p0 = scmp.lt.s32.totalorder %s1252_s7, %s1245_s24 }
  0x21   : > { %p1249_p12 = pneg %p1248_p10  ;;  %p1255_p1 = por %p1254_p0, %p1253_p9 }
  0x23   : > { %p1256_p2 = pnand %p1255_p1, %p1249_p12 }
  0x25   : > { %1259 = shalt.err (!%p1256_p2)
}
  0x26   : > { %s1331_s9 = smov 128   ;;  %s1332_s13 = smov 8  }
  0x27   : > { %1175 = dma.hbm_to_vmem [thread:$0]  (!%p1420_p8), %s1414_s8, 512, %s1418_s10, %s187_s12, %s1331_s9, %s1331_s9, %s1332_s13  }
  0x28   : > { %p233_p9 = scmp.lt.s32.totalorder %s1328_s21, 3  ;;  %s1462_s16 = scalar_lea.hbm %s1735_s3, %s1010_s30 }
  0x29   : > { %p1741_p13 = scmp.ge.s32.totalorder %s1328_s21, 1  ;;  %s211_s18 = scalar_lea.vmem [#allocation5], %s972_s29 }
  0x2a   : > { %s218_s24 = sshll.u32 %s211_s18, 4  ;;  %s208_s8 = scalar_lea.sflag [#allocation6], %s1405_s28  ;;  %s1472_s24 = int_to_ptr.vmem [resolvable:$true] %s218_s24 }
  0x2b   : > { %p1466_p3 = pnand %p1741_p13, %p233_p9  ;;  %s1260_s10 = scalar_lea.hbm %s1462_s16, 512 }
  0x2c   : > { %p1261_p4 = scmp.ne.s32.totalorder %s1462_s16, %s1260_s10  ;;  %s1265_s12 = scalar_lea.hbm %s1735_s3, 1024 }
  0x2d   : > { %p1266_p10 = scmp.lt.u32.totalorder %s1462_s16, %s1735_s3  ;;  %p1267_p12 = scmp.lt.u32.totalorder %s1265_s12, %s1260_s10 }
  0x2e   : > { %p1263_p5 = pnand %p1261_p4, %p1232_p11  ;;  %p1269_p1 = scmp.lt.u32.totalorder %s1260_s10, %s1462_s16 }
  0x2f   : > { %p1268_p0 = por %p1267_p12, %p1266_p10 }
  0x30   : > { %p1264_p6 = pneg %p1263_p5 }
  0x31   : > { %p1270_p2 = por %p1269_p1, %p1268_p0 }
  0x33   : > { %p1271_p9 = pnand %p1270_p2, %p1264_p6 }
  0x35   : > { %1274 = shalt.err (!%p1271_p9)
}
  0x36   : > { %s1275_s29 = scalar_lea.vmem %s1472_s24, 512  ;;  %s1333_s7 = smov [#allocation5]  }
  0x37   : > { %p1276_p13 = scmp.ne.s32.totalorder %s1472_s24, %s1275_s29  ;;  %s1280_s14 = sshll.u32 %s1333_s7, 4  ;;  %s1281_s14 = int_to_ptr.vmem [resolvable:$false] %s1280_s14 }
  0x38   : > { %s1282_s15 = scalar_lea.vmem %s1281_s14, 1024  ;;  %p1283_p7 = scmp.lt.s32.totalorder %s1472_s24, %s1281_s14 }
  0x39   : > { %p1278_p4 = pnand %p1276_p13, %p1232_p11  ;;  %p1284_p10 = scmp.lt.s32.totalorder %s1282_s15, %s1275_s29 }
  0x3b   : > { %p1279_p5 = pneg %p1278_p4  ;;  %p1285_p12 = por %p1284_p10, %p1283_p7 }
  0x3d   : > { %p1286_p0 = pnand %p1285_p12, %p1279_p5 }
  0x3f   : > { %1289 = shalt.err (!%p1286_p0)
}
  0x40   : > { %1178 = dma.hbm_to_vmem [thread:$0]  (!%p1420_p8), %s1462_s16, 512, %s1472_s24, %s208_s8, %s1331_s9, %s1331_s9, %s1332_s13  }
  0x41   : > { %237 = sbr.rel (%p1466_p3) target bundleno = 864 (0x360), region = 40  ;;  %s239_s18 = sand.u32 (!%p1466_p3), 1, %s1320_s19  }
  0x42   : > { %s979_s10 = sshll.u32 (!%p1466_p3), %s239_s18, 5  ;;  %s240_s21 = scalar_lea.sflag (!%p1466_p3), [#allocation4], %s239_s18 }
  0x43   : > { %s1506_s30 = scalar_lea.vmem (!%p1466_p3), [#allocation3], %s979_s10  ;;  %p1743_p7 = scmp.ne.s32.totalorder (!%p1466_p3), %s1739_s27, 0 }
  0x48   : > { %1307 = dma.done.wait (%p1743_p7), %s240_s21, 512  }
  0x49   : > { %1309 = vsyncadd (%p1743_p7), %s240_s21, 4294966784  ;;  %s249_s28 = scalar_lea.sflag [#allocation6], %s239_s18  ;;  %s1512_s11 = scalar_lea.vmem [#allocation5], %s979_s10 }
  0x4a   : > { %1311 = dma.done.wait (%p1743_p7), %s249_s28, 512  }
  0x4b   : > { %1313 = vsyncadd (%p1743_p7), %s249_s28, 4294966784  ;;  %p283_p8 = scmp.lt.s32.totalorder %s1383_s22, 1  ;;  %p982_p11 = scmp.ne.s32.totalorder %s1383_s22, 0 }
  0x4c   : > { %v291_v0 = vld [vmem:[%s1732_s0] sm:$0xff] (!%p982_p11)  ;;  %vm299_vm0 = vcmask (!%p982_p11), 261120   ;;  %v292_v1 = vld [vmem:[%s1732_s0 + $0x8] sm:$0xff] (!%p982_p11)  ;;  %v293_v2 = vld [vmem:[%s1732_s0 + $0x10] sm:$0xff] (!%p982_p11) }
  0x4d   : > { %s284_s9 = scalar_select %p283_p8, %s1383_s22, 1 }
  0x4e   : > { %290 = sbr.rel (%p982_p11) target bundleno = 85 (0x55), region = 52  ;;  %300 = vst.msk [vmem:[#allocation2] sm:$0xff] (!%p982_p11), %vm299_vm0, %v291_v0  ;;  %301 = vst.msk [vmem:[#allocation2 + $0x8] sm:$0xff] (!%p982_p11), %vm299_vm0, %v292_v1  ;;  %v294_v3 = vld [vmem:[%s1732_s0 + $0x18] sm:$0xff] (!%p982_p11)  ;;  %v295_v4 = vld [vmem:[%s1732_s0 + $0x20] sm:$0xff] (!%p982_p11) }
  0x4f   : > { %s981_s13 = sshll.u32 %s284_s9, 2  ;;  %302 = vst.msk [vmem:[#allocation2 + $0x10] sm:$0xff] (!%p982_p11), %vm299_vm0, %v293_v2  ;;  %v296_v5 = vld [vmem:[%s1732_s0 + $0x28] sm:$0xff] (!%p982_p11)  ;;  %303 = vst.msk [vmem:[#allocation2 + $0x18] sm:$0xff] (!%p982_p11), %vm299_vm0, %v294_v3  ;;  %v297_v6 = vld [vmem:[%s1732_s0 + $0x30] sm:$0xff] (!%p982_p11) }
  0x50   : > { %s1523_s24 = scalar_lea.vmem %s1736_s4, %s981_s13  ;;  %304 = vst.msk [vmem:[#allocation2 + $0x20] sm:$0xff] (!%p982_p11), %vm299_vm0, %v295_v4  ;;  %305 = vst.msk [vmem:[#allocation2 + $0x28] sm:$0xff] (!%p982_p11), %vm299_vm0, %v296_v5  ;;  %v298_v7 = vld [vmem:[%s1732_s0 + $0x38] sm:$0xff] (!%p982_p11) }
  0x51   : > { %306 = vst.msk [vmem:[#allocation2 + $0x30] sm:$0xff] (!%p982_p11), %vm299_vm0, %v297_v6  ;;  %307 = vst.msk [vmem:[#allocation2 + $0x38] sm:$0xff] (!%p982_p11), %vm299_vm0, %v298_v7 }
  0x55 PF: > { %v308_v8 = vld [vmem:[#allocation2] sm:$0xff]  ;;  %vm317_vm1 = vcmask 261120   ;;  %v309_v10 = vld [vmem:[#allocation2 + $0x8] sm:$0xff]  ;;  %v449_v6 = vld [vmem:[%s1506_s30 + $0x10] sm:$0xff]  ;;  %vm697_vm2 = vcmask 523264   ;;  %p1007_p3 = scmp.ne.s32.totalorder %s1383_s22, 1 }
  0x56   : > { %v310_v9 = vld [vmem:[#allocation2 + $0x10] sm:$0xff]  ;;  %v318_v11 = vsel %vm317_vm1, %v308_v8, 0.0  ;;  %v311_v13 = vld [vmem:[#allocation2 + $0x18] sm:$0xff]  ;;  %v321_v14 = vsel %vm317_vm1, %v309_v10, 0.0  ;;  %v447_v0 = vld [vmem:[%s1506_s30] sm:$0xff] }
  0x57   : > { %v324_v12 = vsel %vm317_vm1, %v310_v9, 0.0  ;;  %319 = vadd.xlane.f32.xlu0 %v318_v11  ;;  %v327_v15 = vsel %vm317_vm1, %v311_v13, 0.0  ;;  %v312_v16 = vld [vmem:[#allocation2 + $0x20] sm:$0xff]  ;;  %v313_v17 = vld [vmem:[#allocation2 + $0x28] sm:$0xff]  ;;  %v450_v7 = vld [vmem:[%s1506_s30 + $0x18] sm:$0xff] }
  0x58   : > { %325 = vadd.xlane.f32.xlu1 %v324_v12  ;;  %v330_v18 = vsel %vm317_vm1, %v312_v16, 0.0  ;;  %v333_v19 = vsel %vm317_vm1, %v313_v17, 0.0  ;;  %v314_v20 = vld [vmem:[#allocation2 + $0x30] sm:$0xff]  ;;  %v315_v21 = vld [vmem:[#allocation2 + $0x38] sm:$0xff]  ;;  %v448_v1 = vld [vmem:[%s1506_s30 + $0x8] sm:$0xff] }
  0x59   : > { %v336_v22 = vsel %vm317_vm1, %v314_v20, 0.0  ;;  %v339_v23 = vsel %vm317_vm1, %v315_v21, 0.0  ;;  %v588_v2 = vld [vmem:[%s1512_s11] sm:$0xff]  ;;  %v1120_v3 = vpack.c.bf16 %v448_v1, %v447_v0  ;;  %v589_v4 = vld [vmem:[%s1512_s11 + $0x8] sm:$0xff] }
  0x5a   : > { %v1128_v5 = vpack.c.bf16 %v589_v4, %v588_v2 }
  0x5b   : > { %322 = vadd.xlane.f32.xlu0 %v321_v14  ;;  %1121 = vmatprep.subr.bf16.mxu0 %v1120_v3  ;;  %v423_v14 = vlaneseq }
  0x5c   : > { %328 = vadd.xlane.f32.xlu1 %v327_v15  ;;  %1129 = vmatprep.subr.bf16.mxu1 %v1128_v5 }
  0x5d   : > { %1123 = vmatpush3.bf16.msra.mxu0 %v1120_v3  ;;  %1131 = vmatpush3.bf16.msra.mxu1 %v1128_v5 }
  0x5f   : > { %331 = vadd.xlane.f32.xlu0 %v330_v18 }
  0x60   : > { %334 = vadd.xlane.f32.xlu1 %v333_v19 }
  0x63   : > { %337 = vadd.xlane.f32.xlu0 %v336_v22 }
  0x64   : > { %340 = vadd.xlane.f32.xlu1 %v339_v23 }
  0xe4   : > { %v320_v24 = vpop.xlane.xlu0 %319 }
  0xe5   : > { %v326_v25 = vpop.xlane.xlu1 %325  ;;  %v343_v26 = vmul.f32 0.03125, %v320_v24 }
  0xe6   : > { %v345_v27 = vmul.f32 0.03125, %v326_v25 }
  0xe7   : > { %v1558_v28 = vsub.f32 %v308_v8, %v343_v26  ;;  %v590_v8 = vld [vmem:[%s1512_s11 + $0x10] sm:$0xff] }
  0xe8   : > { %v1560_v29 = vsub.f32 %v310_v9, %v345_v27  ;;  %v323_v30 = vpop.xlane.xlu0 %322  ;;  %v1124_v9 = vpack.c.bf16 %v450_v7, %v449_v6 }
  0xe9   : > { %v329_v31 = vpop.xlane.xlu1 %328  ;;  %v344_v32 = vmul.f32 0.03125, %v323_v30  ;;  %v359_v34 = vmul.f32 %v1558_v28, %v1558_v28 }
  0xea   : > { %v346_v33 = vmul.f32 0.03125, %v329_v31  ;;  %v361_v35 = vmul.f32 %v1560_v29, %v1560_v29  ;;  %1125 = vmatprep.subr.bf16.mxu0 %v1124_v9 }
  0xeb   : > { %v1566_v36 = vsub.f32 %v309_v10, %v344_v32  ;;  %v367_v38 = vsel %vm317_vm1, %v359_v34, 0.0  ;;  %v591_v10 = vld [vmem:[%s1512_s11 + $0x18] sm:$0xff]  ;;  %1127 = vmatpush3.bf16.msra.mxu0 %v1124_v9  ;;  %v1610_v32 = vld [vmem:[%s1523_s24] sm:$0xf] }
  0xec   : > { %v1568_v37 = vsub.f32 %v311_v13, %v346_v33  ;;  %368 = vadd.xlane.f32.xlu0 %v367_v38  ;;  %v332_v39 = vpop.xlane.xlu0 %331  ;;  %v373_v41 = vsel %vm317_vm1, %v361_v35, 0.0  ;;  %v1132_v11 = vpack.c.bf16 %v591_v10, %v590_v8 }
  0xed   : > { %v335_v40 = vpop.xlane.xlu1 %334  ;;  %v347_v42 = vmul.f32 0.03125, %v332_v39  ;;  %v360_v44 = vmul.f32 %v1566_v36, %v1566_v36 }
  0xee   : > { %v348_v43 = vmul.f32 0.03125, %v335_v40  ;;  %v362_v45 = vmul.f32 %v1568_v37, %v1568_v37  ;;  %1133 = vmatprep.subr.bf16.mxu1 %v1132_v11 }
  0xef   : > { %v1576_v46 = vsub.f32 %v312_v16, %v347_v42  ;;  %v370_v48 = vsel %vm317_vm1, %v360_v44, 0.0  ;;  %1135 = vmatpush3.bf16.msra.mxu1 %v1132_v11 }
  0xf0   : > { %v1578_v47 = vsub.f32 %v313_v17, %v348_v43  ;;  %374 = vadd.xlane.f32.xlu0 %v373_v41  ;;  %371 = vadd.xlane.f32.xlu1 %v370_v48  ;;  %v338_v49 = vpop.xlane.xlu0 %337  ;;  %v376_v51 = vsel %vm317_vm1, %v362_v45, 0.0 }
  0xf1   : > { %v341_v50 = vpop.xlane.xlu1 %340  ;;  %v349_v52 = vmul.f32 0.03125, %v338_v49  ;;  %v363_v54 = vmul.f32 %v1576_v46, %v1576_v46 }
  0xf2   : > { %v350_v53 = vmul.f32 0.03125, %v341_v50  ;;  %v364_v55 = vmul.f32 %v1578_v47, %v1578_v47 }
  0xf3   : > { %v1586_v56 = vsub.f32 %v314_v20, %v349_v52  ;;  %v379_v58 = vsel %vm317_vm1, %v363_v54, 0.0  ;;  %v1606_v20 = vshrl.u32 %v423_v14, 7 }
  0xf4   : > { %v1588_v57 = vsub.f32 %v315_v21, %v350_v53  ;;  %377 = vadd.xlane.f32.xlu1 %v376_v51  ;;  %380 = vadd.xlane.f32.xlu0 %v379_v58  ;;  %v382_v59 = vsel %vm317_vm1, %v364_v55, 0.0 }
  0xf5   : > { %v365_v60 = vmul.f32 %v1586_v56, %v1586_v56  ;;  %v425_v27 = vsub.s32 0, %v1606_v20  ;;  %v437_v35 = vsub.s32 1, %v1606_v20 }
  0xf6   : > { %v366_v61 = vmul.f32 %v1588_v57, %v1588_v57 }
  0xf7   : > { %v385_v62 = vsel %vm317_vm1, %v365_v60, 0.0  ;;  %v426_v40 = vrot.slane %v1610_v32, %v425_v27  ;;  %v438_v48 = vrot.slane %v1610_v32, %v437_v35  ;;  %v582_v35 = vld [vmem:[%s1733_s1 + $0x10] sm:$0xff] }
  0xf8   : > { %383 = vadd.xlane.f32.xlu1 %v382_v59  ;;  %386 = vadd.xlane.f32.xlu0 %v385_v62  ;;  %v388_v63 = vsel %vm317_vm1, %v366_v61, 0.0 }
  0xfc   : > { %389 = vadd.xlane.f32.xlu1 %v388_v63 }
 0x179   : > { %v369_v12 = vpop.xlane.xlu0 %368 }
 0x17a   : > { %v391_v13 = vmul.f32 0.03125, %v369_v12  ;;  %v580_v12 = vld [vmem:[%s1733_s1] sm:$0xff] }
 0x17c   : > { %v399_v15 = vadd.f32 1e-05, %v391_v13 }
 0x17d   : > { %v372_v16 = vpop.xlane.xlu1 %371  ;;  %v375_v17 = vpop.xlane.xlu0 %374 }
 0x17e   : > { %1214 = vrsqrt.f32 %v399_v15  ;;  %v392_v18 = vmul.f32 0.03125, %v372_v16  ;;  %v393_v19 = vmul.f32 0.03125, %v375_v17 }
 0x180   : > { %v400_v21 = vadd.f32 1e-05, %v392_v18  ;;  %v401_v22 = vadd.f32 1e-05, %v393_v19 }
 0x181   : > { %v378_v23 = vpop.xlane.xlu1 %377  ;;  %v381_v24 = vpop.xlane.xlu0 %380 }
 0x182   : > { %1216 = vrsqrt.f32 %v400_v21  ;;  %v394_v25 = vmul.f32 0.03125, %v378_v23  ;;  %v395_v26 = vmul.f32 0.03125, %v381_v24 }
 0x183   : > { %1218 = vrsqrt.f32 %v401_v22 }
 0x184   : > { %v402_v30 = vadd.f32 1e-05, %v394_v25  ;;  %v403_v31 = vadd.f32 1e-05, %v395_v26 }
 0x185   : > { %v384_v33 = vpop.xlane.xlu1 %383  ;;  %v387_v34 = vpop.xlane.xlu0 %386 }
 0x186   : > { %1220 = vrsqrt.f32 %v402_v30  ;;  %v396_v38 = vmul.f32 0.03125, %v384_v33  ;;  %v397_v39 = vmul.f32 0.03125, %v387_v34  ;;  %v581_v33 = vld [vmem:[%s1733_s1 + $0x8] sm:$0xff] }
 0x187   : > { %1222 = vrsqrt.f32 %v403_v31  ;;  %v585_v34 = vld [vmem:[%s1733_s1 + $0x28] sm:$0xff] }
 0x188   : > { %v1215_v41 = vpop.eup %1214  ;;  %v404_v42 = vadd.f32 1e-05, %v396_v38  ;;  %v405_v43 = vadd.f32 1e-05, %v397_v39  ;;  %v586_v38 = vld [vmem:[%s1733_s1 + $0x30] sm:$0xff]  ;;  %v583_v39 = vld [vmem:[%s1733_s1 + $0x18] sm:$0xff] }
 0x189   : > { %v390_v44 = vpop.xlane.xlu1 %389  ;;  %v415_v45 = vmul.f32 %v1215_v41, %v1558_v28  ;;  %v829_v41 = vsub.s32 2, %v1606_v20 }
 0x18a   : > { %1224 = vrsqrt.f32 %v404_v42  ;;  %v398_v49 = vmul.f32 0.03125, %v390_v44  ;;  %v841_v42 = vsub.s32 3, %v1606_v20 }
 0x18b   : > { %1226 = vrsqrt.f32 %v405_v43  ;;  %v427_v50 = vmul.f32 %v426_v40, %v415_v45  ;;  %v830_v43 = vrot.slane %v1610_v32, %v829_v41 }
 0x18c   : > { %v1217_v51 = vpop.eup %1216  ;;  %v406_v52 = vadd.f32 1e-05, %v398_v49  ;;  %v842_v44 = vrot.slane %v1610_v32, %v841_v42 }
 0x18d   : > { %v1219_v53 = vpop.eup %1218  ;;  %v439_v54 = vadd.f32 %v438_v48, %v427_v50  ;;  %v416_v55 = vmul.f32 %v1217_v51, %v1566_v36 }
 0x18e   : > { %1228 = vrsqrt.f32 %v406_v52  ;;  %v417_v58 = vmul.f32 %v1219_v53, %v1560_v29 }
 0x18f   : > { %1060 = vmatprep.mubr.msk.f32.mxu0 %vm317_vm1, %v439_v54  ;;  %1080 = vmatprep.mubr.msk.f32.mxu1 %vm317_vm1, %v439_v54  ;;  %v428_v28 = vmul.f32 %v426_v40, %v416_v55 }
 0x190   : > { %v1221_v59 = vpop.eup %1220  ;;  %v429_v60 = vmul.f32 %v426_v40, %v417_v58 }
 0x191   : > { %v1223_v61 = vpop.eup %1222  ;;  %v440_v62 = vadd.f32 %v438_v48, %v428_v28  ;;  %v418_v63 = vmul.f32 %v1221_v59, %v1568_v37 }
 0x192   : > { %v441_v0 = vadd.f32 %v438_v48, %v429_v60  ;;  %v419_v1 = vmul.f32 %v1223_v61, %v1576_v46 }
 0x193   : > { %1061 = vmatmul.mubr.msk.f32.vlgmr.msra.gmra.mrb[0].mxu0 %vm317_vm1, %v440_v62  ;;  %1081 = vmatmul.mubr.msk.f32.vlgmr.msra.gmra.mrb[0].mxu1 %vm317_vm1, %v440_v62  ;;  %v430_v36 = vmul.f32 %v426_v40, %v418_v63 }
 0x194   : > { %v1225_v29 = vpop.eup %1224  ;;  %1063 = vmatprep.mubr.msk.f32.mxu0 %vm317_vm1, %v441_v0  ;;  %1083 = vmatprep.mubr.msk.f32.mxu1 %vm317_vm1, %v441_v0  ;;  %v431_v2 = vmul.f32 %v426_v40, %v419_v1 }
 0x195   : > { %v1227_v3 = vpop.eup %1226  ;;  %v442_v4 = vadd.f32 %v438_v48, %v430_v36  ;;  %v420_v5 = vmul.f32 %v1225_v29, %v1578_v47 }
 0x196   : > { %v443_v6 = vadd.f32 %v438_v48, %v431_v2  ;;  %v421_v37 = vmul.f32 %v1227_v3, %v1586_v56 }
 0x197   : > { %1064 = vmatmul.mubr.msk.f32.gmra.mrb[2].mxu0 %vm317_vm1, %v442_v4  ;;  %1084 = vmatmul.mubr.msk.f32.gmra.mrb[2].mxu1 %vm317_vm1, %v442_v4  ;;  %v432_v46 = vmul.f32 %v426_v40, %v420_v5 }
 0x198   : > { %v1229_v7 = vpop.eup %1228  ;;  %1066 = vmatprep.mubr.msk.f32.mxu0 %vm317_vm1, %v443_v6  ;;  %1086 = vmatprep.mubr.msk.f32.mxu1 %vm317_vm1, %v443_v6  ;;  %v433_v8 = vmul.f32 %v426_v40, %v421_v37 }
 0x199   : > { %v444_v9 = vadd.f32 %v438_v48, %v432_v46  ;;  %v422_v10 = vmul.f32 %v1229_v7, %v1588_v57  ;;  %v584_v57 = vld [vmem:[%s1733_s1 + $0x20] sm:$0xff] }
 0x19a   : > { %v445_v11 = vadd.f32 %v438_v48, %v433_v8 }
 0x19b   : > { %1067 = vmatmul.mubr.msk.f32.gmra.mrb[4].mxu0 %vm317_vm1, %v444_v9  ;;  %1087 = vmatmul.mubr.msk.f32.gmra.mrb[4].mxu1 %vm317_vm1, %v444_v9  ;;  %v434_v47 = vmul.f32 %v426_v40, %v422_v10  ;;  %v587_v40 = vld [vmem:[%s1733_s1 + $0x38] sm:$0xff] }
 0x19c   : > { %1069 = vmatprep.mubr.msk.f32.mxu0 %vm317_vm1, %v445_v11  ;;  %1089 = vmatprep.mubr.msk.f32.mxu1 %vm317_vm1, %v445_v11 }
 0x19d   : > { %v446_v56 = vadd.f32 %v438_v48, %v434_v47 }
 0x19f   : > { %1070 = vmatmul.mubr.msk.f32.gmra.mrb[6].mxu0 %vm317_vm1, %v446_v56  ;;  %1090 = vmatmul.mubr.msk.f32.gmra.mrb[6].mxu1 %vm317_vm1, %v446_v56 }
 0x1a0   : > { %1108 = vmatprep.mubr.msk.f32.mxu0 %vm697_vm2, %v580_v12  ;;  %1114 = vmatprep.mubr.msk.f32.mxu1 %vm697_vm2, %v584_v57 }
 0x266   : > { %v1062_v13 = vpop.f32.mrb[0].mxu0  ;;  %v1082_v14 = vpop.f32.mrb[0].mxu1 }
 0x267   : > { %v541_v15 = vpop.f32.mrb[1].mxu0  ;;  %v658_v16 = vpop.f32.mrb[1].mxu1 }
 0x268   : > { %v1136_v17 = vpack.c.bf16 %v1062_v13, %v541_v15 }
 0x26a   : > { %v1065_v18 = vpop.f32.mrb[2].mxu0  ;;  %v1085_v19 = vpop.f32.mrb[2].mxu1  ;;  %1137 = vmatprep.subr.bf16.mxu0 %v1136_v17  ;;  %1152 = vmatprep.subr.bf16.mxu1 %v1136_v17 }
 0x26b   : > { %v551_v21 = vpop.f32.mrb[3].mxu0  ;;  %v1647_v22 = vpop.f32.mrb[3].mxu1  ;;  %1139 = vmatpush3.bf16.msra.mxu0 %v1136_v17  ;;  %1156 = vmatpush3.bf16.msra.mxu1 %v1136_v17 }
 0x26c   : > { %v1140_v23 = vpack.c.bf16 %v1065_v18, %v551_v21 }
 0x26e   : > { %v1068_v24 = vpop.f32.mrb[4].mxu0  ;;  %1141 = vmatprep.subr.bf16.mxu0 %v1140_v23  ;;  %1153 = vmatprep.subr.bf16.mxu1 %v1140_v23 }
 0x26f   : > { %v561_v25 = vpop.f32.mrb[5].mxu0  ;;  %1143 = vmatpush3.bf16.msra.mxu0 %v1140_v23  ;;  %1157 = vmatpush3.bf16.msra.mxu1 %v1140_v23 }
 0x270   : > { %v1144_v26 = vpack.c.bf16 %v1068_v24, %v561_v25 }
 0x272   : > { %v1071_v27 = vpop.f32.mrb[6].mxu0  ;;  %1145 = vmatprep.subr.bf16.mxu0 %v1144_v26  ;;  %1154 = vmatprep.subr.bf16.mxu1 %v1144_v26 }
 0x273   : > { %v571_v30 = vpop.f32.mrb[7].mxu0  ;;  %1147 = vmatpush3.bf16.msra.mxu0 %v1144_v26  ;;  %1158 = vmatpush3.bf16.msra.mxu1 %v1144_v26 }
 0x274   : > { %v1148_v31 = vpack.c.bf16 %v1071_v27, %v571_v30 }
 0x276   : > { %1149 = vmatprep.subr.bf16.mxu0 %v1148_v31  ;;  %1155 = vmatprep.subr.bf16.mxu1 %v1148_v31 }
 0x277   : > { %1151 = vmatpush3.bf16.msra.mxu0 %v1148_v31  ;;  %1159 = vmatpush3.bf16.msra.mxu1 %v1148_v31 }
 0x27a   : > { %1109 = vmatmul.mubr.msk.f32.vlgmr.msra.gmra.mrb[8].mxu0 %vm697_vm2, %v581_v33  ;;  %1115 = vmatmul.mubr.msk.f32.vlgmr.msra.gmra.mrb[4].mxu1 %vm697_vm2, %v585_v34 }
 0x27b   : > { %1111 = vmatprep.mubr.msk.f32.mxu0 %vm697_vm2, %v582_v35  ;;  %1117 = vmatprep.mubr.msk.f32.mxu1 %vm697_vm2, %v586_v38 }
 0x27e   : > { %1112 = vmatmul.mubr.msk.f32.gmra.mrb[10].mxu0 %vm697_vm2, %v583_v39  ;;  %1118 = vmatmul.mubr.msk.f32.gmra.mrb[6].mxu1 %vm697_vm2, %v587_v40 }
 0x34d   : > { %v1110_v45 = vpop.f32.mrb[8].mxu0  ;;  %v1116_v48 = vpop.f32.mrb[4].mxu1 }
 0x34e   : > { %v794_v49 = vadd.f32 %v1110_v45, %v1082_v14  ;;  %v836_v50 = vmul.f32 %v1116_v48, %v830_v43  ;;  %v788_v51 = vpop.f32.mrb[9].mxu0  ;;  %v808_v52 = vpop.f32.mrb[5].mxu1 }
 0x34f   : > { %v789_v53 = vadd.f32 %v788_v51, %v658_v16  ;;  %v835_v54 = vmul.f32 %v830_v43, %v808_v52 }
 0x350   : > { %v832_v55 = vmul.f32 %v830_v43, %v794_v49  ;;  %v848_v58 = vadd.f32 %v842_v44, %v836_v50 }
 0x351   : > { %v831_v28 = vmul.f32 %v830_v43, %v789_v53  ;;  %v847_v59 = vadd.f32 %v842_v44, %v835_v54  ;;  %v1113_v60 = vpop.f32.mrb[10].mxu0  ;;  %v1119_v61 = vpop.f32.mrb[6].mxu1 }
 0x352   : > { %v844_v62 = vadd.f32 %v842_v44, %v832_v55  ;;  %vm856_vm3 = vcmp.gt.f32.partialorder %v848_v58, 0.0  ;;  %v864_v20 = vmul.f32 0.01, %v848_v58  ;;  %v804_v63 = vadd.f32 %v1113_v60, %v1085_v19  ;;  %v798_v0 = vpop.f32.mrb[11].mxu0  ;;  %v818_v32 = vpop.f32.mrb[7].mxu1 }
 0x353   : > { %v843_v1 = vadd.f32 %v842_v44, %v831_v28  ;;  %vm855_vm4 = vcmp.gt.f32.partialorder %v847_v59, 0.0  ;;  %v863_v36 = vmul.f32 0.01, %v847_v59  ;;  %v838_v29 = vmul.f32 %v1119_v61, %v830_v43 }
 0x354   : > { %vm852_vm5 = vcmp.gt.f32.partialorder %v844_v62, 0.0  ;;  %v860_v2 = vmul.f32 0.01, %v844_v62  ;;  %v872_v3 = vsel %vm856_vm3, %v848_v58, %v864_v20  ;;  %v834_v4 = vmul.f32 %v830_v43, %v804_v63 }
 0x355   : > { %880 = vst.msk [vmem:[#allocation2 + $0x28] sm:$0xff] %vm317_vm1, %v872_v3  ;;  %vm851_vm6 = vcmp.gt.f32.partialorder %v843_v1, 0.0  ;;  %v859_v5 = vmul.f32 0.01, %v843_v1  ;;  %v871_v6 = vsel %vm855_vm4, %v847_v59, %v863_v36  ;;  %v850_v37 = vadd.f32 %v842_v44, %v838_v29  ;;  %892 = vst.msk [vmem:[%s1737_s5 + $0x28] sm:$0xff] (!%p1007_p3), %vm317_vm1, %v872_v3 }
 0x356   : > { %v868_v46 = vsel %vm852_vm5, %v844_v62, %v860_v2  ;;  %879 = vst.msk [vmem:[#allocation2 + $0x20] sm:$0xff] %vm317_vm1, %v871_v6  ;;  %v846_v7 = vadd.f32 %v842_v44, %v834_v4  ;;  %v799_v8 = vadd.f32 %v798_v0, %v1647_v22  ;;  %v837_v9 = vmul.f32 %v830_v43, %v818_v32 }
 0x357   : > { %876 = vst.msk [vmem:[#allocation2 + $0x8] sm:$0xff] %vm317_vm1, %v868_v46  ;;  %v867_v10 = vsel %vm851_vm6, %v843_v1, %v859_v5  ;;  %vm858_vm7 = vcmp.gt.f32.partialorder %v850_v37, 0.0  ;;  %v866_v11 = vmul.f32 0.01, %v850_v37  ;;  %888 = vst.msk [vmem:[%s1737_s5 + $0x8] sm:$0xff] (!%p1007_p3), %vm317_vm1, %v868_v46 }
 0x358   : > { %875 = vst.msk [vmem:[#allocation2] sm:$0xff] %vm317_vm1, %v867_v10  ;;  %vm854_vm8 = vcmp.gt.f32.partialorder %v846_v7, 0.0  ;;  %v862_v47 = vmul.f32 0.01, %v846_v7  ;;  %v833_v56 = vmul.f32 %v830_v43, %v799_v8  ;;  %v849_v12 = vadd.f32 %v842_v44, %v837_v9  ;;  %887 = vst.msk [vmem:[%s1737_s5] sm:$0xff] (!%p1007_p3), %vm317_vm1, %v867_v10 }
 0x359   : > { %v874_v57 = vsel %vm858_vm7, %v850_v37, %v866_v11  ;;  %886 = sbr.rel (%p1007_p3) target bundleno = 864 (0x360), region = 56  ;;  %891 = vst.msk [vmem:[%s1737_s5 + $0x20] sm:$0xff] (!%p1007_p3), %vm317_vm1, %v871_v6 }
 0x35a   : > { %v870_v13 = vsel %vm854_vm8, %v846_v7, %v862_v47  ;;  %882 = vst.msk [vmem:[#allocation2 + $0x38] sm:$0xff] %vm317_vm1, %v874_v57  ;;  %v845_v14 = vadd.f32 %v842_v44, %v833_v56  ;;  %vm857_vm9 = vcmp.gt.f32.partialorder %v849_v12, 0.0  ;;  %v865_v15 = vmul.f32 0.01, %v849_v12  ;;  %894 = vst.msk [vmem:[%s1737_s5 + $0x38] sm:$0xff] (!%p1007_p3), %vm317_vm1, %v874_v57 }
 0x35b   : > { %878 = vst.msk [vmem:[#allocation2 + $0x18] sm:$0xff] %vm317_vm1, %v870_v13  ;;  %890 = vst.msk [vmem:[%s1737_s5 + $0x18] sm:$0xff] (!%p1007_p3), %vm317_vm1, %v870_v13 }
 0x35c   : > { %vm853_vm10 = vcmp.gt.f32.partialorder %v845_v14, 0.0  ;;  %v861_v16 = vmul.f32 0.01, %v845_v14  ;;  %v873_v17 = vsel %vm857_vm9, %v849_v12, %v865_v15 }
 0x35d   : > { %881 = vst.msk [vmem:[#allocation2 + $0x30] sm:$0xff] %vm317_vm1, %v873_v17  ;;  %893 = vst.msk [vmem:[%s1737_s5 + $0x30] sm:$0xff] (!%p1007_p3), %vm317_vm1, %v873_v17 }
 0x35e   : > { %v869_v18 = vsel %vm853_vm10, %v845_v14, %v861_v16 }
 0x35f   : > { %877 = vst.msk [vmem:[#allocation2 + $0x10] sm:$0xff] %vm317_vm1, %v869_v18  ;;  %889 = vst.msk [vmem:[%s1737_s5 + $0x10] sm:$0xff] (!%p1007_p3), %vm317_vm1, %v869_v18 }
 0x360 PF: > { %p18_p6 = scmp.ge.s32.totalorder %s1386_s23, 4   ;;  %s1744_s18 = smov %s1320_s19 }
 0x361   : > { %s1745_s19 = smov %s1324_s20  ;;  %s1746_s20 = smov %s1396_s26 }
 0x362   : > { %s1747_s21 = smov %s1386_s23  ;;  %20 = sbr.rel (!%p18_p6) target bundleno = 5 (0x5), region = 100 }
 0x369   :  { %906 = vsyncpa [#allocation4], 1 }
 0x36a   :  { %908 = vsyncpa [#allocation4 + $0x1], 1 }
 0x36b   :  { %909 = vsyncpa [#allocation6], 1 }
 0x36c   :  { %911 = vsyncpa [#allocation6 + $0x1], 1 }

</bundles_post_ra>
